<compile_context>
chip_gen: v5e
topology: v5e:2x2
jax: 0.10.0
libtpu: 0.0.40
codegen_flags: <defaults>
</compile_context>

<pallas_src>
import functools
import math

import jax
import jax.numpy as jnp
from jax import lax
from jax.experimental import pallas as pl
from jax.experimental.pallas import tpu as pltpu

_HIGHEST = lax.Precision.HIGHEST
_HIGH = lax.Precision.HIGH


# ----------------------------------------------------------------------------
# Tiling / VMEM helpers.
# ----------------------------------------------------------------------------
def _vmem_budget_bytes():
    """Physical VMEM capacity with ~25% headroom; safe fallback 48 MiB."""
    cap = 64 * 2**20
    try:
        info = pltpu.get_tpu_info()
        cap = int(getattr(info, "vmem_capacity_bytes", cap))
    except Exception:
        pass
    return max(32 * 2**20, (3 * cap) // 4)


def _round_up(x, m):
    return ((x + m - 1) // m) * m


def _divisor_tile(total, cap):
    """Largest multiple of 128 that divides `total` (itself a multiple of 128)
    and is <= cap."""
    tile = max(128, min(total, (cap // 128) * 128))
    while total % tile != 0:
        tile -= 128
    return tile


def _pick_tile(total, per_col_bytes, budget_bytes, cap=2048):
    max_cols = max(128, budget_bytes // max(per_col_bytes, 1))
    return _divisor_tile(total, min(cap, max_cols))


# ----------------------------------------------------------------------------
# 1. Fused channel-LayerNorm + to_qkv 1x1 conv (no bias).
# ----------------------------------------------------------------------------
def _ln_qkv_kernel(x_ref, g_ref, b_ref, w_ref, o_ref, *, eps, inv_c):
    # x_ref: (1, C, T) spatial tile of one batch element.
    x = x_ref[0].astype(jnp.float32)                     # (C, T)
    mean = jnp.sum(x, axis=0, keepdims=True) * inv_c     # (1, T)
    xc = x - mean
    var = jnp.sum(xc * xc, axis=0, keepdims=True) * inv_c
    # PyTorch module adds eps to std (not var).
    inv_std = pl.reciprocal(jnp.sqrt(var) + eps, approx=False)
    xn = xc * inv_std
    xn = xn * g_ref[0].astype(jnp.float32) + b_ref[0].astype(jnp.float32)
    y = jnp.dot(w_ref[...].astype(jnp.float32), xn,
                preferred_element_type=jnp.float32, precision=_HIGHEST)
    o_ref[0] = y.astype(o_ref.dtype)


def ln_qkv_conv(x2, g2, b2, w_qkv, eps):
    """x2: (N, C, Lp); g2/b2: (1, C, 1); w_qkv: (Cout, C) -> (N, Cout, Lp)."""
    N, C, Lp = x2.shape
    Cout = w_qkv.shape[0]
    itemsize = jnp.dtype(x2.dtype).itemsize
    budget = _vmem_budget_bytes()
    per_col = (C + Cout) * (2 * itemsize + 8)
    tile = _pick_tile(Lp, per_col, budget // 6)

    kernel = functools.partial(_ln_qkv_kernel, eps=float(eps), inv_c=1.0 / C)
    return pl.pallas_call(
        kernel,
        out_shape=jax.ShapeDtypeStruct((N, Cout, Lp), x2.dtype),
        grid_spec=pltpu.PrefetchScalarGridSpec(
            num_scalar_prefetch=0,
            grid=(N, Lp // tile),
            in_specs=[
                pl.BlockSpec((1, C, tile), lambda n, s: (n, 0, s)),
                pl.BlockSpec((1, C, 1), lambda n, s: (0, 0, 0)),
                pl.BlockSpec((1, C, 1), lambda n, s: (0, 0, 0)),
                pl.BlockSpec((Cout, C), lambda n, s: (0, 0)),
            ],
            out_specs=pl.BlockSpec((1, Cout, tile), lambda n, s: (n, 0, s)),
        ),
        compiler_params=pltpu.CompilerParams(
            dimension_semantics=("parallel", "parallel"),
            vmem_limit_bytes=budget,
        ),
    )(x2, g2, b2, w_qkv)


# ----------------------------------------------------------------------------
# 2. to_out 1x1 conv (with bias).
# ----------------------------------------------------------------------------
def _conv_bias_kernel(x_ref, w_ref, b_ref, o_ref):
    x = x_ref[0].astype(jnp.float32)                     # (Cin, T)
    y = jnp.dot(w_ref[...].astype(jnp.float32), x,
                preferred_element_type=jnp.float32, precision=_HIGHEST)
    y = y + b_ref[...].astype(jnp.float32)
    o_ref[0] = y.astype(o_ref.dtype)


def pointwise_conv_bias(x, w, bias):
    """x: (B, Cin, Lp), w: (Cout, Cin), bias: (Cout,) -> (B, Cout, Lp)."""
    B, Cin, Lp = x.shape
    Cout = w.shape[0]
    b2 = bias.reshape(Cout, 1)
    itemsize = jnp.dtype(x.dtype).itemsize
    budget = _vmem_budget_bytes()
    per_col = (Cin + Cout) * (2 * itemsize + 8)
    tile = _pick_tile(Lp, per_col, budget // 6)

    return pl.pallas_call(
        _conv_bias_kernel,
        out_shape=jax.ShapeDtypeStruct((B, Cout, Lp), x.dtype),
        grid_spec=pltpu.PrefetchScalarGridSpec(
            num_scalar_prefetch=0,
            grid=(B, Lp // tile),
            in_specs=[
                pl.BlockSpec((1, Cin, tile), lambda b, s: (b, 0, s)),
                pl.BlockSpec((Cout, Cin), lambda b, s: (0, 0)),
                pl.BlockSpec((Cout, 1), lambda b, s: (0, 0)),
            ],
            out_specs=pl.BlockSpec((1, Cout, tile), lambda b, s: (b, 0, s)),
        ),
        compiler_params=pltpu.CompilerParams(
            dimension_semantics=("parallel", "parallel"),
            vmem_limit_bytes=budget,
        ),
    )(x, w, b2)


# ----------------------------------------------------------------------------
# 3. Flash attention, reading heads straight out of the packed qkv tensor.
#    Working layout: dim_head on sublanes, L on lanes.
# ----------------------------------------------------------------------------
def _flash_attn_kernel(q_ref, k_ref, v_ref, o_ref, m_ref, l_ref, acc_ref,
                       *, scale, l_valid, kv_tile, need_mask):
    ki = pl.program_id(3)

    @pl.when(ki == 0)
    def _():
        m_ref[...] = jnp.full_like(m_ref, -jnp.inf)
        l_ref[...] = jnp.zeros_like(l_ref)
        acc_ref[...] = jnp.zeros_like(acc_ref)

    q = q_ref[0].astype(jnp.float32) * scale             # (D, Tq)
    k = k_ref[0].astype(jnp.float32)                     # (D, Tk)
    v = v_ref[0].astype(jnp.float32)                     # (D, Tk)

    # sim[j, i] = sum_d k[d, j] * q[d, i]  -> (Tk, Tq): keys on sublanes,
    # queries lane-dense (matches the (D, Tq) accumulator & unmasked stores).
    sim = lax.dot_general(k, q, dimension_numbers=(((0,), (0,)), ((), ())),
                          preferred_element_type=jnp.float32, precision=_HIGH)
    if need_mask:
        key_idx = ki * kv_tile + lax.broadcasted_iota(jnp.int32, sim.shape, 0)
        sim = jnp.where(key_idx < l_valid, sim, -jnp.inf)

    m_prev = m_ref[...]                                  # (1, Tq)
    m_new = jnp.maximum(m_prev, jnp.max(sim, axis=0, keepdims=True))
    alpha = jnp.exp(m_prev - m_new)                      # (1, Tq)
    p = jnp.exp(sim - m_new)                             # (Tk, Tq)
    l_ref[...] = alpha * l_ref[...] + jnp.sum(p, axis=0, keepdims=True)
    acc_ref[...] = alpha * acc_ref[...] + jnp.dot(
        v, p, preferred_element_type=jnp.float32, precision=_HIGH)
    m_ref[...] = m_new

    @pl.when(ki == pl.num_programs(3) - 1)
    def _():
        o_ref[0] = (acc_ref[...] *
                    pl.reciprocal(l_ref[...], approx=False)).astype(o_ref.dtype)


def attention_from_qkv(qkv, *, heads, dim_head, l_valid, scale):
    """qkv: (N, 3*heads*dim_head, Lp) -> out: (N, heads*dim_head, Lp).

    Per-head blocks are addressed directly via BlockSpec index maps (no head
    split / transpose in HBM). kv axis is flash-tiled (online softmax)."""
    N, C3, Lp = qkv.shape
    inner = heads * dim_head
    assert C3 == 3 * inner
    budget = _vmem_budget_bytes()
    # Score tile (Tk, Tq) f32 + its exp copy dominate VMEM; keep it ~<= 2 MiB.
    tq = _divisor_tile(Lp, 512)
    tk = tq
    nq, nk = Lp // tq, Lp // tk
    need_mask = (Lp != l_valid)

    kernel = functools.partial(
        _flash_attn_kernel, scale=float(scale), l_valid=int(l_valid),
        kv_tile=int(tk), need_mask=need_mask)

    return pl.pallas_call(
        kernel,
        out_shape=jax.ShapeDtypeStruct((N, inner, Lp), qkv.dtype),
        grid_spec=pltpu.PrefetchScalarGridSpec(
            num_scalar_prefetch=0,
            grid=(N, heads, nq, nk),
            in_specs=[
                # channel axis in dim_head-sized block units:
                #   q head h -> block h, k -> heads + h, v -> 2*heads + h.
                pl.BlockSpec((1, dim_head, tq),
                             lambda n, h, qi, ki: (n, h, qi)),
                pl.BlockSpec((1, dim_head, tk),
                             lambda n, h, qi, ki: (n, heads + h, ki)),
                pl.BlockSpec((1, dim_head, tk),
                             lambda n, h, qi, ki: (n, 2 * heads + h, ki)),
            ],
            out_specs=pl.BlockSpec((1, dim_head, tq),
                                   lambda n, h, qi, ki: (n, h, qi)),
            scratch_shapes=[
                pltpu.VMEM((1, tq), jnp.float32),          # m
                pltpu.VMEM((1, tq), jnp.float32),          # l
                pltpu.VMEM((dim_head, tq), jnp.float32),   # acc
            ],
        ),
        compiler_params=pltpu.CompilerParams(
            dimension_semantics=("parallel", "parallel", "parallel", "arbitrary"),
            vmem_limit_bytes=budget,
        ),
    )(qkv, qkv, qkv)


# ----------------------------------------------------------------------------
# Full GlobalMHRA forward.
# ----------------------------------------------------------------------------
def global_mhra(x, params, *, heads, dim_head, eps=1e-05):
    """GlobalMHRA.forward for x of shape (N, C, H, W)."""
    N, C, H, W = x.shape
    assert dim_head % 8 == 0, "dim_head must be a multiple of 8 (sublane tile)"
    L = H * W
    Lp = _round_up(L, 128)

    x2 = x.reshape(N, C, L)
    if Lp != L:
        x2 = jnp.pad(x2, ((0, 0), (0, 0), (0, Lp - L)))

    g2 = params["g"].reshape(1, C, 1)
    b2 = params["b"].reshape(1, C, 1)

    # Fused LayerNorm + to_qkv (bias-free) projection.
    qkv = ln_qkv_conv(x2, g2, b2, params["w_qkv"], eps)          # (N, 3*inner, Lp)

    # Flash attention, per-head blocks read directly from qkv; output already
    # in 'b (h d) n' layout (no transposes).
    out = attention_from_qkv(qkv, heads=heads, dim_head=dim_head,
                             l_valid=L, scale=dim_head ** -0.5)   # (N, inner, Lp)

    out = pointwise_conv_bias(out, params["w_out"], params["b_out"])  # (N, C, Lp)
    if Lp != L:
        out = out[:, :, :L]
    return out.reshape(N, C, H, W)


# ----------------------------------------------------------------------------
# Pure-JAX reference (same semantics as the PyTorch module).
# ----------------------------------------------------------------------------
def global_mhra_reference(x, params, *, heads, dim_head, eps=1e-05):
    N, C, H, W = x.shape
    inner = heads * dim_head
    L = H * W
    mean = jnp.mean(x, axis=1, keepdims=True)
    var = jnp.mean((x - mean) ** 2, axis=1, keepdims=True)
    xn = (x - mean) / (jnp.sqrt(var) + eps) * params["g"] + params["b"]
    x2 = xn.reshape(N, C, L)
    qkv = jnp.einsum("oc,bcl->bol", params["w_qkv"], x2, precision=_HIGHEST)
    q, k, v = jnp.split(qkv, 3, axis=1)

    def to_h(t):
        return t.reshape(N, heads, dim_head, L).transpose(0, 1, 3, 2)

    q, k, v = map(to_h, (q, k, v))
    q = q * dim_head ** -0.5
    sim = jnp.einsum("bhid,bhjd->bhij", q, k, precision=_HIGHEST)
    attn = jax.nn.softmax(sim, axis=-1)
    out = jnp.einsum("bhij,bhjd->bhid", attn, v, precision=_HIGHEST)
    out = out.transpose(0, 1, 3, 2).reshape(N, inner, L)
    out = jnp.einsum("oc,bcl->bol", params["w_out"], out, precision=_HIGHEST)
    out = out + params["b_out"][None, :, None]
    return out.reshape(N, C, H, W)


if __name__ == "__main__":
    key = jax.random.PRNGKey(0)
    N, C, H, W = 2, 4, 16, 16
    heads, dim_head = 2, 8
    inner = heads * dim_head

    kx, kq, ko, kb = jax.random.split(key, 4)
    x = jax.random.normal(kx, (N, C, H, W), dtype=jnp.float32)

    params = {
        # LayerNorm params: nn.Parameter(torch.ones/zeros(1, dim, 1, 1)).
        "g": jnp.ones((1, C, 1, 1), dtype=jnp.float32),
        "b": jnp.zeros((1, C, 1, 1), dtype=jnp.float32),
        # 1x1 Conv1d weights, kernel dim squeezed: (Cout, Cin).
        "w_qkv": jax.random.normal(kq, (3 * inner, C), jnp.float32) / math.sqrt(C),
        "w_out": jax.random.normal(ko, (C, inner), jnp.float32) / math.sqrt(inner),
        "b_out": 0.1 * jax.random.normal(kb, (C,), jnp.float32),
    }

    out = global_mhra(x, params, heads=heads, dim_head=dim_head, eps=1e-05)
    out = jax.block_until_ready(out)

    ref = global_mhra_reference(x, params, heads=heads, dim_head=dim_head, eps=1e-05)
    assert out.shape == x.shape
    max_err = float(jnp.max(jnp.abs(out - ref)))
    assert jnp.allclose(out, ref, atol=2e-4, rtol=2e-4), f"mismatch: {max_err}"

    print("KERNEL_OK")
</pallas_src>

<mosaic_0001>
module attributes {stable_mosaic.version = 11 : i64} {
  func.func @_ln_qkv_kernel(%arg0: i32, %arg1: i32, %arg2: memref<1x4x256xf32, #tpu.memory_space<vmem>>, %arg3: memref<1x4x1xf32, #tpu.memory_space<vmem>>, %arg4: memref<1x4x1xf32, #tpu.memory_space<vmem>>, %arg5: memref<48x4xf32, #tpu.memory_space<vmem>>, %arg6: memref<1x48x256xf32, #tpu.memory_space<vmem>>) attributes {dimension_semantics = [#tpu.dimension_semantics<parallel>, #tpu.dimension_semantics<parallel>], iteration_bounds = array<i64: 2, 1>, scalar_prefetch = 0 : i64, scratch_operands = 0 : i64, tpu.core_type = #tpu.core_type<tc>, window_params = [{transform_indices = @transform_0, window_bounds = array<i64: 1, 4, 256>}, {pipeline_mode = #tpu.pipeline_mode<synchronous>, transform_indices = @transform_1, window_bounds = array<i64: 1, 4, 1>}, {pipeline_mode = #tpu.pipeline_mode<synchronous>, transform_indices = @transform_2, window_bounds = array<i64: 1, 4, 1>}, {pipeline_mode = #tpu.pipeline_mode<synchronous>, transform_indices = @transform_3, window_bounds = array<i64: 48, 4>}, {transform_indices = @transform_4, window_bounds = array<i64: 1, 48, 256>}]} {
    %c0 = arith.constant 0 : index
    %c0_0 = arith.constant 0 : index
    %c0_1 = arith.constant 0 : index
    %0 = vector.load %arg2[%c0, %c0_0, %c0_1] : memref<1x4x256xf32, #tpu.memory_space<vmem>>, vector<1x4x256xf32>
    %1 = vector.shape_cast %0 : vector<1x4x256xf32> to vector<4x256xf32>
    %cst = arith.constant dense<0.000000e+00> : vector<256xf32>
    %2 = vector.multi_reduction <add>, %1, %cst [0] : vector<4x256xf32> to vector<256xf32>
    %3 = vector.shape_cast %2 : vector<256xf32> to vector<1x256xf32>
    %cst_2 = arith.constant 2.500000e-01 : f32
    %4 = vector.broadcast %cst_2 : f32 to vector<1x256xf32>
    %5 = arith.mulf %3, %4 : vector<1x256xf32>
    %6 = vector.broadcast %5 : vector<1x256xf32> to vector<4x256xf32>
    %7 = arith.subf %1, %6 : vector<4x256xf32>
    %8 = arith.mulf %7, %7 : vector<4x256xf32>
    %cst_3 = arith.constant dense<0.000000e+00> : vector<256xf32>
    %9 = vector.multi_reduction <add>, %8, %cst_3 [0] : vector<4x256xf32> to vector<256xf32>
    %10 = vector.shape_cast %9 : vector<256xf32> to vector<1x256xf32>
    %cst_4 = arith.constant 2.500000e-01 : f32
    %11 = vector.broadcast %cst_4 : f32 to vector<1x256xf32>
    %12 = arith.mulf %10, %11 : vector<1x256xf32>
    %13 = math.sqrt %12 : vector<1x256xf32>
    %cst_5 = arith.constant 9.99999974E-6 : f32
    %14 = vector.broadcast %cst_5 : f32 to vector<1x256xf32>
    %15 = arith.addf %13, %14 : vector<1x256xf32>
    %16 = tpu.reciprocal %15 : vector<1x256xf32> -> vector<1x256xf32>
    %17 = vector.broadcast %16 : vector<1x256xf32> to vector<4x256xf32>
    %18 = arith.mulf %7, %17 : vector<4x256xf32>
    %c0_6 = arith.constant 0 : index
    %c0_7 = arith.constant 0 : index
    %c0_8 = arith.constant 0 : index
    %19 = vector.load %arg3[%c0_6, %c0_7, %c0_8] : memref<1x4x1xf32, #tpu.memory_space<vmem>>, vector<1x4x1xf32>
    %20 = vector.shape_cast %19 : vector<1x4x1xf32> to vector<4x1xf32>
    %21 = vector.broadcast %20 : vector<4x1xf32> to vector<4x256xf32>
    %22 = arith.mulf %18, %21 : vector<4x256xf32>
    %c0_9 = arith.constant 0 : index
    %c0_10 = arith.constant 0 : index
    %c0_11 = arith.constant 0 : index
    %23 = vector.load %arg4[%c0_9, %c0_10, %c0_11] : memref<1x4x1xf32, #tpu.memory_space<vmem>>, vector<1x4x1xf32>
    %24 = vector.shape_cast %23 : vector<1x4x1xf32> to vector<4x1xf32>
    %25 = vector.broadcast %24 : vector<4x1xf32> to vector<4x256xf32>
    %26 = arith.addf %22, %25 : vector<4x256xf32>
    %c0_12 = arith.constant 0 : index
    %c0_13 = arith.constant 0 : index
    %27 = vector.load %arg5[%c0_12, %c0_13] : memref<48x4xf32, #tpu.memory_space<vmem>>, vector<48x4xf32>
    %cst_14 = arith.constant dense<0.000000e+00> : vector<48x256xf32>
    %28 = tpu.matmul %27, %26, %cst_14 {dimension_numbers = #tpu.dot_dimension_numbers<[1], [0], [0], [1], [0, 0, 1, 1], [], []>, precision = #tpu.contract_precision<fp32>} : vector<48x4xf32>, vector<4x256xf32>, vector<48x256xf32> -> vector<48x256xf32>
    %c0_15 = arith.constant 0 : index
    %c0_16 = arith.constant 0 : index
    %c0_17 = arith.constant 0 : index
    %29 = vector.load %arg6[%c0_15, %c0_16, %c0_17] : memref<1x48x256xf32, #tpu.memory_space<vmem>>, vector<1x48x256xf32>
    %30 = vector.shape_cast %29 : vector<1x48x256xf32> to vector<48x256xf32>
    %31 = vector.shape_cast %28 : vector<48x256xf32> to vector<1x48x256xf32>
    tpu.vector_store %arg6[%c0_15, %c0_16, %c0_17], %31 {strides = array<i32>} : memref<1x48x256xf32, #tpu.memory_space<vmem>>, vector<1x48x256xf32>,
    return
  }
  func.func @transform_0(%arg0: i32, %arg1: i32) -> (i32, i32, i32) {
    %c0_i32 = arith.constant 0 : i32
    %c0_i32_0 = arith.constant 0 : i32
    return %arg0, %c0_i32, %arg1 : i32, i32, i32
  }
  func.func @transform_1(%arg0: i32, %arg1: i32) -> (i32, i32, i32) {
    %c0_i32 = arith.constant 0 : i32
    %c0_i32_0 = arith.constant 0 : i32
    %c0_i32_1 = arith.constant 0 : i32
    %c0_i32_2 = arith.constant 0 : i32
    return %c0_i32, %c0_i32_0, %c0_i32_1 : i32, i32, i32
  }
  func.func @transform_2(%arg0: i32, %arg1: i32) -> (i32, i32, i32) {
    %c0_i32 = arith.constant 0 : i32
    %c0_i32_0 = arith.constant 0 : i32
    %c0_i32_1 = arith.constant 0 : i32
    %c0_i32_2 = arith.constant 0 : i32
    return %c0_i32, %c0_i32_0, %c0_i32_1 : i32, i32, i32
  }
  func.func @transform_3(%arg0: i32, %arg1: i32) -> (i32, i32) {
    %c0_i32 = arith.constant 0 : i32
    %c0_i32_0 = arith.constant 0 : i32
    %c0_i32_1 = arith.constant 0 : i32
    return %c0_i32, %c0_i32_0 : i32, i32
  }
  func.func @transform_4(%arg0: i32, %arg1: i32) -> (i32, i32, i32) {
    %c0_i32 = arith.constant 0 : i32
    %c0_i32_0 = arith.constant 0 : i32
    return %arg0, %c0_i32, %arg1 : i32, i32, i32
  }
}

</mosaic_0001>

<bundles_post_ra>
// kernel: tpu_custom_call.1
= control target key start
LH: loop header
LB: loop body
LE: loop exit
PB: predicated region body
PF: predicated region fallthrough
CT: control target
= control target key end

     0   :  { %9 = vsyncpa [#allocation3], 0  ;;  %s1579_s0 = inlined_call_operand.vmem [shape: f32[2,4,256], index: 0, kind: input, shape index: {}]   ;;  %s1580_s1 = inlined_call_operand.vmem [shape: f32[1,4,1], index: 1, kind: input, shape index: {}]   ;;  %s1581_s2 = inlined_call_operand.vmem [shape: f32[1,4,1], index: 2, kind: input, shape index: {}]   ;;  %s1582_s3 = inlined_call_operand.vmem [shape: f32[48,4], index: 3, kind: input, shape index: {}]   ;;  %s1583_s4 = inlined_call_operand.hbm [shape: f32[2,48,256], index: 4, kind: output, shape index: {}]  }
   0x1   :  { %11 = vsyncpa [#allocation3 + $0x1], 0  ;;  %s1296_s15 = smov 0   ;;  %s1298_s16 = smov 0  }
   0x2   :  { %s1300_s17 = smov 0   ;;  %s1302_s18 = smov 0  }
   0x3   :  { %s1304_s19 = smov 0   ;;  %s1306_s20 = smov 0  }
   0x4 LB: > { %s1106_s21 = sadd.s32 4294967295, %s1265_s20   ;;  %s1107_s22 = sadd.s32 4294967294, %s1265_s20   ;;  %s1265_s20 = sphi %s1306_s20, %s17_s20   ;;  %s1261_s19 = sphi %s1304_s19, %s1590_s19   ;;  %s1257_s18 = sphi %s1302_s18, %s1589_s18   ;;  %s1253_s17 = sphi %s1300_s17, %s1588_s17   ;;  %s1249_s16 = sphi %s1298_s16, %s1587_s16   ;;  %s1245_s15 = sphi %s1296_s15, %s1586_s15  }
   0x5   : > { %s29_s23 = sadd.s32 1, %s1261_s19  ;;  %s129_s24 = sadd.s32 1, %s1253_s17 }
   0x6   : > { %p31_p0 = scmp.ge.s32.totalorder %s29_s23, 2  ;;  %p139_p1 = scmp.ne.s32.totalorder %s1253_s17, %s1249_s16 }
   0x7   : > { %p140_p2 = scmp.eq.s32.totalorder %s1106_s21, 1  ;;  %p145_p3 = scmp.ne.s32.totalorder %s1249_s16, %s1245_s15 }
   0x8   : > { %s1592_s23 = smov (%p31_p0, %s29_s23), 0  ;;  %p146_p5 = scmp.eq.s32.totalorder %s1107_s22, 1 }
   0x9   : > { %p1336_p4 = por %p140_p2, %p139_p1  ;;  %s124_s26 = ssub.s32 %s1261_s19, %s1592_s23 }
   0xa   : > { %p1110_p6 = scmp.ge.s32.totalorder %s1265_s20, 1  ;;  %p127_p7 = scmp.eq.s32.totalorder %s124_s26, 0 }
   0xb   : > { %p1343_p8 = por %p146_p5, %p145_p3  ;;  %p186_p9 = scmp.lt.s32.totalorder %s1265_s20, 3 }
   0xc   : > { %s1349_s28 = scalar_select %p127_p7, %s1253_s17, %s129_s24  }
   0xd   : > { %p187_p10 = pnand %p1110_p6, %p186_p9 }
   0xe   : > { %p217_p11 = scmp.lt.s32.totalorder (!%p187_p10), %s1257_s18, 1  ;;  %s213_s8 = sand.u32 (!%p187_p10), 1, %s1249_s16  }
   0xf   : > { %190 = sbr.rel (%p187_p10) target bundleno = 441 (0x1b9), region = 36 }
  0x10   : > { %s1118_s11 = smul.u32 (!%p187_p10), 96, %s1257_s18 }
  0x12   : > { %s1023_s14 = scalar_lea.hbm (!%p187_p10), %s1583_s4, %s1118_s11 }
  0x13   : > { %s1026_s22 = sshll.u32 (!%p187_p10), %s1023_s14, 4  ;;  %s1027_s22 = int_to_ptr.hbm [resolvable:$true] %s1026_s22 }
  0x14   : > { %v340_v0 = vld [vmem:[%s1580_s1] sm:$0xf]  ;;  %v1267_v1 = vmov 0   ;;  %s218_s5 = scalar_select %p217_p11, %s1257_s18, 1  ;;  %vm234_vm0 = vcmask 1043456   ;;  %vm372_vm13 = vcmask 31744  }
  0x15   : > { %1178 = vset.pattern.permute.xlu0 %v1267_v1  ;;  %v351_v3 = vld [vmem:[%s1581_s2] sm:$0xf]  ;;  %s1010_s18 = scalar_lea.sflag [#allocation3], %s213_s8  ;;  %s1201_s24 = sshra.s32 %s1027_s22, 4  ;;  %s1202_s24 = int_to_ptr.hbm [resolvable:$true] %s1201_s24 }
  0x16   : > { %343 = vperm.xlu0 %1178, %v340_v0   ;;  %s1116_s6 = sshll.u32 %s218_s5, 3  ;;  %s1203_s26 = scalar_lea.hbm %s1202_s24, 96 }
  0x17   : > { %s224_s9 = scalar_lea.vmem %s1579_s0, %s1116_s6  ;;  %p1204_p12 = scmp.ne.s32.totalorder %s1202_s24, %s1203_s26 }
  0x18   : > { %v227_v2 = vld [vmem:[%s224_s9] sm:$0xff]  ;;  %s1117_s9 = smul.u32 96, %s213_s8  ;;  %s1207_s5 = scalar_lea.hbm %s1583_s4, 192 }
  0x19   : > { %229 = vst [vmem:[#allocation1] ss:$2 sm:$0xff] %v227_v2  ;;  %p1205_p13 = pnand %p1204_p12, %p1336_p4  ;;  %p1208_p1 = scmp.lt.s32.totalorder %s1202_s24, %s1583_s4 }
  0x1a   : > { %s1526_s10 = scalar_lea.vmem [#allocation2], %s1117_s9  ;;  %p1209_p2 = scmp.lt.s32.totalorder %s1207_s5, %s1203_s26 }
  0x1b   : > { %s1024_s21 = sshll.u32 %s1526_s10, 4  ;;  %p1206_p0 = pneg %p1205_p13  ;;  %s1025_s21 = int_to_ptr.vmem [resolvable:$true] %s1024_s21 }
  0x1c   : > { %p1210_p3 = por %p1209_p2, %p1208_p1 }
  0x1e   : > { %354 = vperm.xlu0 %1178, %v351_v3   ;;  %p1211_p5 = pnand %p1210_p3, %p1206_p0 }
  0x20   : > { %v230_v4 = vld.sshfl [vmem:[#allocation1] sm:$0xff pattern:$0x75316420]  ;;  %v231_v5 = vld.sshfl [vmem:[#allocation1 + $0x8] sm:$0xff pattern:$0x75316420] }
  0x21   : > { %v235_v6 = vsel %vm234_vm0, %v230_v4, 0.0  ;;  %v242_v7 = vsel %vm234_vm0, %v231_v5, 0.0 }
  0x22   : > { %v236_v8 = vrot.slane %v235_v6, 4  ;;  %v243_v9 = vrot.slane %v242_v7, 4 }
  0x24   : > { %v237_v10 = vadd.f32 %v236_v8, %v235_v6  ;;  %v244_v11 = vadd.f32 %v243_v9, %v242_v7 }
  0x26   : > { %v238_v12 = vrot.slane %v237_v10, 2  ;;  %v245_v13 = vrot.slane %v244_v11, 2 }
  0x28   : > { %v239_v14 = vadd.f32 %v238_v12, %v237_v10  ;;  %v246_v15 = vadd.f32 %v245_v13, %v244_v11 }
  0x2a   : > { %v240_v16 = vrot.slane %v239_v14, 1  ;;  %v247_v17 = vrot.slane %v246_v15, 1 }
  0x2c   : > { %v241_v18 = vadd.f32 %v240_v16, %v239_v14  ;;  %v248_v19 = vadd.f32 %v247_v17, %v246_v15 }
  0x2e   : > { %v249_v20 = vmul.f32 0.25, %v241_v18  ;;  %v250_v21 = vmul.f32 0.25, %v248_v19 }
  0x30   : > { %v253_v22 = vrot.slane %v250_v21, 4  ;;  %v1268_v21 = vmov 839922192  }
  0x32   : > { %v254_v23 = vsel %vm234_vm0, %v249_v20, %v253_v22  ;;  %v346_v22 = vunpack.c.l.s4 %v1268_v21 }
  0x33   : > { %v1365_v24 = vsub.f32 %v227_v2, %v254_v23  ;;  %v362_v23 = vld [vmem:[%s1582_s3] sm:$0xff] }
  0x35   : > { %v257_v25 = vmul.f32 %v1365_v24, %v1365_v24 }
  0x37   : > { %259 = vst [vmem:[#allocation1] ss:$2 sm:$0xff] %v257_v25 }
  0x3e   : > { %v260_v26 = vld.sshfl [vmem:[#allocation1] sm:$0xff pattern:$0x75316420]  ;;  %v261_v27 = vld.sshfl [vmem:[#allocation1 + $0x8] sm:$0xff pattern:$0x75316420] }
  0x3f   : > { %v264_v28 = vsel %vm234_vm0, %v260_v26, 0.0  ;;  %v271_v29 = vsel %vm234_vm0, %v261_v27, 0.0 }
  0x40   : > { %v265_v30 = vrot.slane %v264_v28, 4  ;;  %v272_v31 = vrot.slane %v271_v29, 4 }
  0x42   : > { %v266_v32 = vadd.f32 %v265_v30, %v264_v28  ;;  %v273_v33 = vadd.f32 %v272_v31, %v271_v29  ;;  %v374_v28 = vsel %vm372_vm13, %v362_v23, 0  ;;  %v347_v29 = vunpack.c.0.s8 %v346_v22 }
  0x43   : > { %v1376_v31 = vand.u32 4294901760, %v374_v28 }
  0x44   : > { %v267_v34 = vrot.slane %v266_v32, 2  ;;  %v274_v35 = vrot.slane %v273_v33, 2 }
  0x46   : > { %v268_v36 = vadd.f32 %v267_v34, %v266_v32  ;;  %v275_v37 = vadd.f32 %v274_v35, %v273_v33  ;;  %v1380_v34 = vsub.f32 %v374_v28, %v1376_v31  ;;  %v363_v35 = vld [vmem:[%s1582_s3 + $0x8] sm:$0xff] }
  0x48   : > { %v269_v38 = vrot.slane %v268_v36, 1  ;;  %v276_v39 = vrot.slane %v275_v37, 1 }
  0x4a   : > { %v270_v40 = vadd.f32 %v269_v38, %v268_v36  ;;  %v277_v41 = vadd.f32 %v276_v39, %v275_v37  ;;  %v377_v39 = vsel %vm372_vm13, %v363_v35, 0 }
  0x4c   : > { %v278_v42 = vmul.f32 0.25, %v270_v40  ;;  %v279_v43 = vmul.f32 0.25, %v277_v41  ;;  %v1387_v41 = vand.u32 4294901760, %v1380_v34 }
  0x4e   : > { %1179 = vrsqrt.f32 %v278_v42  ;;  %vm287_vm1 = vcmp.eq.f32.partialorder %v278_v42, inf  ;;  %v290_v55 = vand.u32 2147483648, %v278_v42  ;;  %vm289_vm2 = vcmp.eq.f32.partialorder %v278_v42, 0.0 }
  0x4f   : > { %1181 = vrsqrt.f32 %v279_v43  ;;  %vm299_vm3 = vcmp.eq.f32.partialorder %v279_v43, inf  ;;  %v302_v58 = vand.u32 2147483648, %v279_v43  ;;  %vm301_vm4 = vcmp.eq.f32.partialorder %v279_v43, 0.0 }
  0x54   : > { %v1180_v44 = vpop.eup %1179 }
  0x55   : > { %v1182_v45 = vpop.eup %1181  ;;  %v281_v46 = vmul.f32 %v1180_v44, %v278_v42 }
  0x56   : > { %v293_v47 = vmul.f32 %v1182_v45, %v279_v43 }
  0x57   : > { %v282_v48 = vmul.f32 %v1180_v44, %v281_v46 }
  0x58   : > { %v294_v49 = vmul.f32 %v1182_v45, %v293_v47 }
  0x59   : > { %v283_v50 = vmul.f32 0.5, %v282_v48 }
  0x5a   : > { %v295_v51 = vmul.f32 0.5, %v294_v49 }
  0x5b   : > { %v284_v52 = vsub.f32 1.5, %v283_v50 }
  0x5c   : > { %v296_v53 = vsub.f32 1.5, %v295_v51 }
  0x5d   : > { %v285_v54 = vmul.f32 %v1180_v44, %v284_v52 }
  0x5e   : > { %v297_v56 = vmul.f32 %v1182_v45, %v296_v53 }
  0x5f   : > { %v286_v57 = vmul.f32 %v285_v54, %v278_v42 }
  0x60   : > { %v298_v59 = vmul.f32 %v297_v56, %v279_v43 }
  0x61   : > { %v288_v60 = vsel %vm287_vm1, %v278_v42, %v286_v57  ;;  %v1389_v42 = vand.u32 4294901760, %v377_v39 }
  0x62   : > { %v291_v61 = vsel %vm289_vm2, %v290_v55, %v288_v60  ;;  %v300_v62 = vsel %vm299_vm3, %v279_v43, %v298_v59  ;;  %v364_v43 = vld [vmem:[%s1582_s3 + $0x10] sm:$0xff]  ;;  %v365_v55 = vld [vmem:[%s1582_s3 + $0x18] sm:$0xff] }
  0x63   : > { %v303_v63 = vsel %vm301_vm4, %v302_v58, %v300_v62  ;;  %v304_v1 = vadd.f32 1e-05, %v291_v61  ;;  %v1397_v44 = vsub.f32 %v377_v39, %v1389_v42  ;;  %v380_v45 = vsel %vm372_vm13, %v364_v43, 0 }
  0x64   : > { %v305_v0 = vadd.f32 1e-05, %v303_v63  ;;  %v1407_v52 = vand.u32 4294901760, %v380_v45  ;;  %v383_v62 = vsel %vm372_vm13, %v365_v55, 0 }
  0x65   : > { %vm311_vm8 = vweird.f32 %v304_v1  ;;  %v317_v13 = vand.u32 2147483648, %v304_v1  ;;  %v315_v16 = vand.u32 2147483647, %v304_v1  ;;  %v1405_v51 = vand.u32 4294901760, %v1397_v44 }
  0x66   : > { %1183 = vrcp.f32 %v305_v0  ;;  %vm325_vm5 = vweird.f32 %v305_v0  ;;  %v331_v9 = vand.u32 2147483648, %v305_v0  ;;  %v329_v12 = vand.u32 2147483647, %v305_v0 }
  0x67   : > { %1185 = vrcp.f32 %v304_v1  ;;  %v318_v18 = vor.u32 1.1754944e-38, %v317_v13  ;;  %vm316_vm12 = vcmp.eq.f32.partialorder %v315_v16, 8.507059e+37  ;;  %v423_v58 = vsub.f32 %v1397_v44, %v1405_v51  ;;  %v367_v13 = vld [vmem:[%s1582_s3 + $0x28] sm:$0xff] }
  0x68   : > { %v332_v14 = vor.u32 1.1754944e-38, %v331_v9  ;;  %vm330_vm10 = vcmp.eq.f32.partialorder %v329_v12, 8.507059e+37  ;;  %v1417_v59 = vsub.f32 %v380_v45, %v1407_v52  ;;  %v389_v16 = vsel %vm372_vm13, %v367_v13, 0 }
  0x6c   : > { %v1184_v2 = vpop.eup %1183 }
  0x6d   : > { %v321_v3 = vmul.f32 %v1184_v2, %v305_v0  ;;  %v1186_v4 = vpop.eup %1185  ;;  %vm326_vm6 = vweird.f32 %v1184_v2 }
  0x6e   : > { %v307_v5 = vmul.f32 %v1186_v4, %v304_v1  ;;  %vm327_vm7 = vmor %vm325_vm5, %vm326_vm6  ;;  %vm312_vm9 = vweird.f32 %v1186_v4  ;;  %v424_v1 = vand.u32 4294901760, %v423_v58 }
  0x6f   : > { %v322_v6 = vsub.f32 1.0, %v321_v3  ;;  %vm313_vm11 = vmor %vm311_vm8, %vm312_vm9  ;;  %v1424_v3 = vand.u32 4294901760, %v383_v62 }
  0x70   : > { %v308_v7 = vsub.f32 1.0, %v307_v5 }
  0x71   : > { %v323_v8 = vmul.f32 %v1184_v2, %v322_v6  ;;  %v366_v6 = vld [vmem:[%s1582_s3 + $0x20] sm:$0xff] }
  0x72   : > { %v309_v10 = vmul.f32 %v1186_v4, %v308_v7  ;;  %v386_v9 = vsel %vm372_vm13, %v366_v6, 0 }
  0x73   : > { %v324_v11 = vadd.f32 %v1184_v2, %v323_v8  ;;  %v1433_v8 = vsub.f32 %v383_v62, %v1424_v3  ;;  %v1441_v12 = vand.u32 4294901760, %v386_v9 }
  0x74   : > { %v310_v15 = vadd.f32 %v1186_v4, %v309_v10 }
  0x75   : > { %v328_v17 = vsel %vm327_vm7, %v1184_v2, %v324_v11  ;;  %v1422_v2 = vand.u32 4294901760, %v1417_v59  ;;  %v1439_v11 = vand.u32 4294901760, %v1433_v8 }
  0x76   : > { %v333_v19 = vsel %vm330_vm10, %v332_v14, %v328_v17  ;;  %v314_v20 = vsel %vm313_vm11, %v1186_v4, %v310_v15  ;;  %v1450_v15 = vsub.f32 %v386_v9, %v1441_v12 }
  0x77   : > { %v336_v25 = vrot.slane %v333_v19, 4  ;;  %v319_v26 = vsel %vm316_vm12, %v318_v18, %v314_v20  ;;  %v431_v7 = vsub.f32 %v1417_v59, %v1422_v2  ;;  %v439_v14 = vsub.f32 %v1433_v8, %v1439_v11 }
  0x78   : > { %v1456_v18 = vand.u32 4294901760, %v1450_v15  ;;  %v1458_v19 = vand.u32 4294901760, %v389_v16 }
  0x79   : > { %v337_v30 = vsel %vm234_vm0, %v319_v26, %v336_v25  ;;  %v432_v10 = vand.u32 4294901760, %v431_v7  ;;  %v440_v17 = vand.u32 4294901760, %v439_v14 }
  0x7a   : > { %v339_v32 = vmul.f32 %v337_v30, %v1365_v24  ;;  %v415_v24 = vsub.f32 %v1380_v34, %v1387_v41  ;;  %v447_v20 = vsub.f32 %v1450_v15, %v1456_v18  ;;  %v1464_v21 = vsub.f32 %v389_v16, %v1458_v19 }
  0x7c   : > { %v1400_v46 = vand.u32 4294901760, %v415_v24  ;;  %v448_v22 = vand.u32 4294901760, %v447_v20  ;;  %v1469_v23 = vand.u32 4294901760, %v1464_v21 }
  0x7e   : > { %v455_v25 = vsub.f32 %v1464_v21, %v1469_v23 }
  0x80   : > { %v456_v26 = vand.u32 4294901760, %v455_v25 }
  0x88   : > { %v344_v27 = vpop.permute.xlu0 %343 }
  0x89   : > { %v348_v33 = vperm.slane %v344_v27, %v347_v29 }
  0x8b   : > { %v350_v37 = vmul.f32 %v348_v33, %v339_v32 }
  0x90   : > { %v355_v36 = vpop.permute.xlu0 %354 }
  0x91   : > { %v359_v38 = vperm.slane %v355_v36, %v347_v29 }
  0x93   : > { %v361_v40 = vadd.f32 %v359_v38, %v350_v37 }
  0x95   : > { %369 = vst [vmem:[#allocation1] ss:$2 sm:$0xff] %v361_v40 }
  0x9c   : > { %v370_v47 = vld.sshfl [vmem:[#allocation1] sm:$0xff pattern:$0x75316420]  ;;  %v371_v48 = vld.sshfl [vmem:[#allocation1 + $0x8] sm:$0xff pattern:$0x75316420] }
  0x9d   : > { %v391_v49 = vsel %vm234_vm0, %v370_v47, 0  ;;  %v393_v50 = vsel %vm234_vm0, %v371_v48, 0 }
  0x9e   : > { %v410_v53 = vand.u32 4294901760, %v391_v49  ;;  %v711_v54 = vand.u32 4294901760, %v393_v50 }
  0xa0   : > { %411 = vmatpush.msra.mxu0 %v410_v53  ;;  %572 = vmatpush.msra.mxu3 %v410_v53  ;;  %v477_v56 = vsub.f32 %v391_v49, %v410_v53  ;;  %v778_v57 = vsub.f32 %v393_v50, %v711_v54 }
  0xa1   : > { %417 = vmatmul.f32.vlgmr.msra.gmra.mxu0 %v1400_v46  ;;  %576 = vmatmul.f32.vlgmr.msra.gmra.mxu3 %v1387_v41 }
  0xa2   : > { %524 = vmatpush.msra.mxu2 %v477_v56  ;;  %v478_v60 = vand.u32 4294901760, %v477_v56  ;;  %v779_v61 = vand.u32 4294901760, %v778_v57 }
  0xa3   : > { %527 = vmatmul.f32.vlgmr.msra.gmra.mxu2 %v1380_v34 }
  0xa4   : > { %712 = vmatpush.msrb.mxu2 %v711_v54  ;;  %628 = vmatpush.msrb.mxu0 %v478_v60  ;;  %v479_v63 = vsub.f32 %v477_v56, %v478_v60  ;;  %v780_v0 = vsub.f32 %v778_v57, %v779_v61 }
  0xa6   : > { %929 = vmatpush.msra.mxu2 %v779_v61  ;;  %825 = vmatpush.msra.mxu0 %v778_v57  ;;  %v480_v4 = vand.u32 4294901760, %v479_v63  ;;  %v781_v5 = vand.u32 4294901760, %v780_v0 }
  0xa8   : > { %481 = vmatpush.msra.mxu1 %v480_v4  ;;  %782 = vmatpush.msrb.mxu3 %v781_v5 }
  0xa9   : > { %425 = vmatmul.f32.gmra.mxu0 %v424_v1  ;;  %483 = vmatmul.f32.vlgmr.msra.gmra.mxu1 %v1376_v31 }
  0xaa   : > { %670 = vmatpush.msrb.mxu1 %v410_v53  ;;  %971 = vmatpush.msra.mxu3 %v711_v54 }
  0xab   : > { %582 = vmatmul.f32.gmra.mxu3 %v1405_v51  ;;  %532 = vmatmul.f32.gmra.mxu2 %v1397_v44 }
  0xac   : > { %873 = vmatpush.msra.mxu1 %v711_v54 }
  0xb1   : > { %433 = vmatmul.f32.gmra.mxu0 %v432_v10  ;;  %487 = vmatmul.f32.gmra.mxu1 %v1389_v42 }
  0xb3   : > { %588 = vmatmul.f32.gmra.mxu3 %v1422_v2  ;;  %537 = vmatmul.f32.gmra.mxu2 %v1417_v59 }
  0xb9   : > { %441 = vmatmul.f32.gmra.mxu0 %v440_v17  ;;  %491 = vmatmul.f32.gmra.mxu1 %v1407_v52 }
  0xbb   : > { %594 = vmatmul.f32.gmra.mxu3 %v1439_v11  ;;  %542 = vmatmul.f32.gmra.mxu2 %v1433_v8 }
  0xc1   : > { %449 = vmatmul.f32.gmra.mxu0 %v448_v22  ;;  %495 = vmatmul.f32.gmra.mxu1 %v1424_v3 }
  0xc3   : > { %600 = vmatmul.f32.gmra.mxu3 %v1456_v18  ;;  %547 = vmatmul.f32.gmra.mxu2 %v1450_v15 }
  0xc9   : > { %457 = vmatmul.f32.gmra.mxu0 %v456_v26  ;;  %499 = vmatmul.f32.gmra.mxu1 %v1441_v12 }
  0xcb   : > { %606 = vmatmul.f32.gmra.mxu3 %v1469_v23  ;;  %552 = vmatmul.f32.gmra.mxu2 %v1464_v21 }
  0xd1   : > { %503 = vmatmul.f32.gmra.mxu1 %v1458_v19  ;;  %630 = vmatmul.f32.vlgmr.msrb.gmra.mxu0 %v1376_v31 }
  0xd3   : > { %784 = vmatmul.f32.vlgmr.msrb.gmra.mxu3 %v1376_v31  ;;  %718 = vmatmul.f32.vlgmr.msrb.gmra.mxu2 %v1400_v46 }
  0xd9   : > { %634 = vmatmul.f32.gmra.mxu0 %v1389_v42  ;;  %672 = vmatmul.f32.vlgmr.msrb.gmra.mxu1 %v1376_v31 }
  0xdb   : > { %788 = vmatmul.f32.gmra.mxu3 %v1389_v42  ;;  %726 = vmatmul.f32.gmra.mxu2 %v424_v1 }
  0xe1   : > { %638 = vmatmul.f32.gmra.mxu0 %v1407_v52  ;;  %676 = vmatmul.f32.gmra.mxu1 %v1389_v42 }
  0xe3   : > { %792 = vmatmul.f32.gmra.mxu3 %v1407_v52  ;;  %734 = vmatmul.f32.gmra.mxu2 %v432_v10 }
  0xe9   : > { %642 = vmatmul.f32.gmra.mxu0 %v1424_v3  ;;  %680 = vmatmul.f32.gmra.mxu1 %v1407_v52 }
  0xeb   : > { %796 = vmatmul.f32.gmra.mxu3 %v1424_v3  ;;  %742 = vmatmul.f32.gmra.mxu2 %v440_v17 }
  0xf1   : > { %646 = vmatmul.f32.gmra.mxu0 %v1441_v12  ;;  %684 = vmatmul.f32.gmra.mxu1 %v1424_v3 }
  0xf3   : > { %800 = vmatmul.f32.gmra.mxu3 %v1441_v12  ;;  %750 = vmatmul.f32.gmra.mxu2 %v448_v22 }
  0xf9   : > { %650 = vmatmul.f32.gmra.mxu0 %v1458_v19  ;;  %688 = vmatmul.f32.gmra.mxu1 %v1441_v12 }
  0xfb   : > { %804 = vmatmul.f32.gmra.mxu3 %v1458_v19  ;;  %758 = vmatmul.f32.gmra.mxu2 %v456_v26 }
 0x101   : > { %692 = vmatmul.f32.gmra.mxu1 %v1458_v19  ;;  %828 = vmatmul.f32.vlgmr.msra.gmra.mxu0 %v1380_v34 }
 0x103   : > { %973 = vmatmul.f32.vlgmr.msra.gmra.mxu3 %v1376_v31  ;;  %931 = vmatmul.f32.vlgmr.msra.gmra.mxu2 %v1376_v31 }
 0x109   : > { %833 = vmatmul.f32.gmra.mxu0 %v1397_v44  ;;  %877 = vmatmul.f32.vlgmr.msra.gmra.mxu1 %v1387_v41 }
 0x10b   : > { %977 = vmatmul.f32.gmra.mxu3 %v1389_v42  ;;  %935 = vmatmul.f32.gmra.mxu2 %v1389_v42 }
 0x111   : > { %838 = vmatmul.f32.gmra.mxu0 %v1417_v59  ;;  %883 = vmatmul.f32.gmra.mxu1 %v1405_v51 }
 0x113   : > { %981 = vmatmul.f32.gmra.mxu3 %v1407_v52  ;;  %939 = vmatmul.f32.gmra.mxu2 %v1407_v52 }
 0x119   : > { %843 = vmatmul.f32.gmra.mxu0 %v1433_v8  ;;  %889 = vmatmul.f32.gmra.mxu1 %v1422_v2 }
 0x11b   : > { %985 = vmatmul.f32.gmra.mxu3 %v1424_v3  ;;  %943 = vmatmul.f32.gmra.mxu2 %v1424_v3 }
 0x11e   : > { %v418_v27 = vpop.f32.mrf.mxu0 }
 0x121   : > { %848 = vmatmul.f32.gmra.mxu0 %v1450_v15  ;;  %895 = vmatmul.f32.gmra.mxu1 %v1439_v11 }
 0x123   : > { %989 = vmatmul.f32.gmra.mxu3 %v1441_v12  ;;  %947 = vmatmul.f32.gmra.mxu2 %v1441_v12 }
 0x124   : > { %v577_v28 = vpop.f32.mrf.mxu3 }
 0x126   : > { %v426_v29 = vpop.f32.mrf.mxu0  ;;  %v484_v30 = vpop.f32.mrf.mxu1 }
 0x127   : > { %v528_v31 = vpop.f32.mrf.mxu2  ;;  %v485_v47 = vadd.f32 %v484_v30, %v418_v27 }
 0x129   : > { %853 = vmatmul.f32.gmra.mxu0 %v1464_v21  ;;  %901 = vmatmul.f32.gmra.mxu1 %v1456_v18  ;;  %v529_v50 = vadd.f32 %v528_v31, %v485_v47 }
 0x12b   : > { %993 = vmatmul.f32.gmra.mxu3 %v1458_v19  ;;  %951 = vmatmul.f32.gmra.mxu2 %v1458_v19  ;;  %v578_v53 = vadd.f32 %v577_v28, %v529_v50 }
 0x12e   : > { %v434_v32 = vpop.f32.mrf.mxu0  ;;  %v488_v33 = vpop.f32.mrf.mxu1 }
 0x12f   : > { %v533_v34 = vpop.f32.mrf.mxu2  ;;  %v583_v35 = vpop.f32.mrf.mxu3  ;;  %v489_v54 = vadd.f32 %v488_v33, %v426_v29 }
 0x131   : > { %907 = vmatmul.f32.gmra.mxu1 %v1469_v23  ;;  %v534_v58 = vadd.f32 %v533_v34, %v489_v54 }
 0x133   : > { %v584_v62 = vadd.f32 %v583_v35, %v534_v58 }
 0x136   : > { %v442_v36 = vpop.f32.mrf.mxu0  ;;  %v492_v37 = vpop.f32.mrf.mxu1 }
 0x137   : > { %v538_v38 = vpop.f32.mrf.mxu2  ;;  %v589_v39 = vpop.f32.mrf.mxu3  ;;  %v493_v63 = vadd.f32 %v492_v37, %v434_v32 }
 0x139   : > { %v539_v3 = vadd.f32 %v538_v38, %v493_v63 }
 0x13b   : > { %v590_v7 = vadd.f32 %v589_v39, %v539_v3 }
 0x13e   : > { %v450_v40 = vpop.f32.mrf.mxu0  ;;  %v496_v41 = vpop.f32.mrf.mxu1 }
 0x13f   : > { %v543_v42 = vpop.f32.mrf.mxu2  ;;  %v595_v24 = vpop.f32.mrf.mxu3  ;;  %v497_v8 = vadd.f32 %v496_v41, %v442_v36 }
 0x141   : > { %v544_v12 = vadd.f32 %v543_v42, %v497_v8 }
 0x143   : > { %v596_v16 = vadd.f32 %v595_v24, %v544_v12 }
 0x146   : > { %v458_v43 = vpop.f32.mrf.mxu0  ;;  %v500_v44 = vpop.f32.mrf.mxu1 }
 0x147   : > { %v548_v45 = vpop.f32.mrf.mxu2  ;;  %v601_v46 = vpop.f32.mrf.mxu3  ;;  %v501_v17 = vadd.f32 %v500_v44, %v450_v40 }
 0x149   : > { %v549_v21 = vadd.f32 %v548_v45, %v501_v17 }
 0x14b   : > { %v602_v26 = vadd.f32 %v601_v46, %v549_v21 }
 0x14e   : > { %v504_v48 = vpop.f32.mrf.mxu1  ;;  %v631_v49 = vpop.f32.mrf.mxu0 }
 0x14f   : > { %v553_v51 = vpop.f32.mrf.mxu2  ;;  %v607_v52 = vpop.f32.mrf.mxu3  ;;  %v632_v55 = vadd.f32 %v631_v49, %v578_v53  ;;  %v505_v27 = vadd.f32 %v504_v48, %v458_v43 }
 0x151   : > { %v554_v31 = vadd.f32 %v553_v51, %v505_v27 }
 0x153   : > { %v608_v35 = vadd.f32 %v607_v52, %v554_v31 }
 0x156   : > { %v635_v56 = vpop.f32.mrf.mxu0  ;;  %v673_v57 = vpop.f32.mrf.mxu1 }
 0x157   : > { %v674_v59 = vadd.f32 %v673_v57, %v632_v55  ;;  %v719_v60 = vpop.f32.mrf.mxu2  ;;  %v785_v61 = vpop.f32.mrf.mxu3  ;;  %v636_v0 = vadd.f32 %v635_v56, %v584_v62 }
 0x158   : > { %v786_v42 = vadd.f32 %v785_v61, %v719_v60 }
 0x159   : > { %997 = vst [vmem:[%s1526_s10] sm:$0xff] %v674_v59 }
 0x15e   : > { %v639_v1 = vpop.f32.mrf.mxu0  ;;  %v677_v2 = vpop.f32.mrf.mxu1 }
 0x15f   : > { %v678_v4 = vadd.f32 %v677_v2, %v636_v0  ;;  %v727_v5 = vpop.f32.mrf.mxu2  ;;  %v789_v6 = vpop.f32.mrf.mxu3  ;;  %v640_v9 = vadd.f32 %v639_v1, %v590_v7 }
 0x160   : > { %v790_v49 = vadd.f32 %v789_v6, %v727_v5 }
 0x161   : > { %999 = vst [vmem:[%s1526_s10 + $0x10] sm:$0xff] %v678_v4 }
 0x166   : > { %v643_v10 = vpop.f32.mrf.mxu0  ;;  %v681_v11 = vpop.f32.mrf.mxu1 }
 0x167   : > { %v682_v13 = vadd.f32 %v681_v11, %v640_v9  ;;  %v735_v14 = vpop.f32.mrf.mxu2  ;;  %v793_v15 = vpop.f32.mrf.mxu3  ;;  %v644_v18 = vadd.f32 %v643_v10, %v596_v16 }
 0x168   : > { %v794_v58 = vadd.f32 %v793_v15, %v735_v14 }
 0x169   : > { %1001 = vst [vmem:[%s1526_s10 + $0x20] sm:$0xff] %v682_v13 }
 0x16e   : > { %v647_v19 = vpop.f32.mrf.mxu0  ;;  %v685_v20 = vpop.f32.mrf.mxu1 }
 0x16f   : > { %v686_v22 = vadd.f32 %v685_v20, %v644_v18  ;;  %v743_v23 = vpop.f32.mrf.mxu2  ;;  %v797_v25 = vpop.f32.mrf.mxu3  ;;  %v648_v28 = vadd.f32 %v647_v19, %v602_v26 }
 0x170   : > { %v798_v3 = vadd.f32 %v797_v25, %v743_v23 }
 0x171   : > { %1003 = vst [vmem:[%s1526_s10 + $0x30] sm:$0xff] %v686_v22 }
 0x176   : > { %v651_v29 = vpop.f32.mrf.mxu0  ;;  %v689_v30 = vpop.f32.mrf.mxu1 }
 0x177   : > { %v690_v32 = vadd.f32 %v689_v30, %v648_v28  ;;  %v751_v33 = vpop.f32.mrf.mxu2  ;;  %v801_v34 = vpop.f32.mrf.mxu3  ;;  %v652_v36 = vadd.f32 %v651_v29, %v608_v35 }
 0x178   : > { %v802_v12 = vadd.f32 %v801_v34, %v751_v33 }
 0x179   : > { %1005 = vst [vmem:[%s1526_s10 + $0x40] sm:$0xff] %v690_v32 }
 0x17e   : > { %v693_v37 = vpop.f32.mrf.mxu1  ;;  %v829_v38 = vpop.f32.mrf.mxu0 }
 0x17f   : > { %v694_v39 = vadd.f32 %v693_v37, %v652_v36  ;;  %v759_v40 = vpop.f32.mrf.mxu2  ;;  %v805_v41 = vpop.f32.mrf.mxu3  ;;  %v830_v24 = vadd.f32 %v829_v38, %v786_v42 }
 0x180   : > { %v806_v21 = vadd.f32 %v805_v41, %v759_v40 }
 0x181   : > { %1007 = vst [vmem:[%s1526_s10 + $0x50] sm:$0xff] %v694_v39 }
 0x186   : > { %v834_v43 = vpop.f32.mrf.mxu0  ;;  %v878_v44 = vpop.f32.mrf.mxu1 }
 0x187   : > { %v879_v45 = vadd.f32 %v878_v44, %v830_v24  ;;  %v932_v46 = vpop.f32.mrf.mxu2  ;;  %v974_v47 = vpop.f32.mrf.mxu3  ;;  %v835_v51 = vadd.f32 %v834_v43, %v790_v49 }
 0x189   : > { %v933_v48 = vadd.f32 %v932_v46, %v879_v45 }
 0x18b   : > { %v975_v50 = vadd.f32 %v974_v47, %v933_v48 }
 0x18d   : > { %998 = vst [vmem:[%s1526_s10 + $0x8] sm:$0xff] %v975_v50 }
 0x18e   : > { %v839_v52 = vpop.f32.mrf.mxu0  ;;  %v884_v53 = vpop.f32.mrf.mxu1 }
 0x18f   : > { %v885_v54 = vadd.f32 %v884_v53, %v835_v51  ;;  %v936_v55 = vpop.f32.mrf.mxu2  ;;  %v978_v56 = vpop.f32.mrf.mxu3  ;;  %v840_v60 = vadd.f32 %v839_v52, %v794_v58 }
 0x191   : > { %v937_v57 = vadd.f32 %v936_v55, %v885_v54 }
 0x193   : > { %v979_v59 = vadd.f32 %v978_v56, %v937_v57 }
 0x195   : > { %1000 = vst [vmem:[%s1526_s10 + $0x18] sm:$0xff] %v979_v59 }
 0x196   : > { %v844_v61 = vpop.f32.mrf.mxu0  ;;  %v890_v62 = vpop.f32.mrf.mxu1 }
 0x197   : > { %v891_v63 = vadd.f32 %v890_v62, %v840_v60  ;;  %v940_v0 = vpop.f32.mrf.mxu2  ;;  %v982_v1 = vpop.f32.mrf.mxu3  ;;  %v845_v5 = vadd.f32 %v844_v61, %v798_v3 }
 0x199   : > { %v941_v2 = vadd.f32 %v940_v0, %v891_v63 }
 0x19b   : > { %v983_v4 = vadd.f32 %v982_v1, %v941_v2 }
 0x19d   : > { %1002 = vst [vmem:[%s1526_s10 + $0x28] sm:$0xff] %v983_v4 }
 0x19e   : > { %v896_v6 = vpop.f32.mrf.mxu1  ;;  %v849_v10 = vpop.f32.mrf.mxu0 }
 0x19f   : > { %v897_v7 = vadd.f32 %v896_v6, %v845_v5  ;;  %v944_v8 = vpop.f32.mrf.mxu2  ;;  %v986_v9 = vpop.f32.mrf.mxu3  ;;  %v850_v14 = vadd.f32 %v849_v10, %v802_v12 }
 0x1a1   : > { %v945_v11 = vadd.f32 %v944_v8, %v897_v7 }
 0x1a3   : > { %v987_v13 = vadd.f32 %v986_v9, %v945_v11 }
 0x1a5   : > { %1004 = vst [vmem:[%s1526_s10 + $0x38] sm:$0xff] %v987_v13 }
 0x1a6   : > { %v902_v15 = vpop.f32.mrf.mxu1  ;;  %v854_v20 = vpop.f32.mrf.mxu0 }
 0x1a7   : > { %v903_v16 = vadd.f32 %v902_v15, %v850_v14  ;;  %v948_v17 = vpop.f32.mrf.mxu2  ;;  %v990_v18 = vpop.f32.mrf.mxu3  ;;  %v855_v23 = vadd.f32 %v854_v20, %v806_v21 }
 0x1a9   : > { %v949_v19 = vadd.f32 %v948_v17, %v903_v16 }
 0x1ab   : > { %v991_v22 = vadd.f32 %v990_v18, %v949_v19 }
 0x1ad   : > { %1006 = vst [vmem:[%s1526_s10 + $0x48] sm:$0xff] %v991_v22 }
 0x1ae   : > { %v908_v25 = vpop.f32.mrf.mxu1 }
 0x1af   : > { %v909_v26 = vadd.f32 %v908_v25, %v855_v23  ;;  %v952_v27 = vpop.f32.mrf.mxu2  ;;  %v994_v28 = vpop.f32.mrf.mxu3 }
 0x1b1   : > { %v953_v29 = vadd.f32 %v952_v27, %v909_v26 }
 0x1b3   : > { %v995_v30 = vadd.f32 %v994_v28, %v953_v29 }
 0x1b5   : > { %1008 = vst [vmem:[%s1526_s10 + $0x58] sm:$0xff] %v995_v30 }
 0x1b6   : > { %1214 = shalt.err (!%p1211_p5)
}
 0x1b7   : > { %s1269_s8 = smov 256   ;;  %s1270_s9 = smov 16  }
 0x1b8   : > { %1119 = dma.vmem_to_hbm [thread:$0]  (%p1336_p4), %s1025_s21, 1536, %s1027_s22, %s1010_s18, %s1269_s8, %s1269_s8, %s1270_s9  }
 0x1b9 PF: > { %p1125_p6 = scmp.ge.s32.totalorder %s1265_s20, 2  ;;  %s1041_s10 = sand.u32 1, %s1245_s15  }
 0x1ba   : > { %s1042_s11 = scalar_lea.sflag [#allocation3], %s1041_s10 }
 0x1bb   : > { %p1122_p7 = pnand %p1125_p6, %p1343_p8 }
 0x1bd   : > { %p1123_p9 = pneg %p1122_p7 }
 0x1bf   : > { %1240 = dma.done.wait (%p1123_p9), %s1042_s11, 1536  }
 0x1c0   : > { %1242 = vsyncadd (%p1123_p9), %s1042_s11, 4294965760  ;;  %s17_s20 = sadd.s32 1, %s1265_s20   ;;  %s1586_s15 = smov %s1249_s16 }
 0x1c1   : > { %p14_p10 = scmp.ge.s32.totalorder %s17_s20, 4   ;;  %s1587_s16 = smov %s1253_s17 }
 0x1c2   : > { %s1588_s17 = smov %s1349_s28  ;;  %s1589_s18 = smov %s1261_s19 }
 0x1c3   : > { %s1590_s19 = smov %s1592_s23  ;;  %16 = sbr.rel (!%p14_p10) target bundleno = 4 (0x4), region = 71 }
 0x1c8   :  { %1048 = vsyncpa [#allocation3], 1 }
 0x1c9   :  { %1050 = vsyncpa [#allocation3 + $0x1], 1 }

</bundles_post_ra>
